<compile_context>
chip_gen: v6e
topology: v6e:2x2x1
jax: 0.10.0
libtpu: 0.0.40
codegen_flags: <defaults>
</compile_context>

<pallas_src>
import functools

import jax
import jax.numpy as jnp
from jax.experimental import pallas as pl
from jax.experimental.pallas import tpu as pltpu


# ----------------------------- Pallas kernels ------------------------------

def fused_diff_kernel(x_ref, w_enc_ref, b_enc_ref, w_dec_ref, b_dec_ref, o_ref):
    """enc(ref|tgt) as ONE matmul, 'diff' fusion, decoder, per-batch store."""
    half = x_ref.shape[-1] // 2                      # N*HW (static, mult of 128)
    # Encoder: one (F, C_in) x (C_in, 2*N*HW) MXU matmul + bias + ReLU.
    f = jnp.maximum(
        jnp.dot(w_enc_ref[...], x_ref[...],
                preferred_element_type=jnp.float32) + b_enc_ref[...],
        0.0)
    # 'diff' fusion: tgt - ref; lane slices are tile-aligned (no copy).
    fused = (f[:, half:] - f[:, :half]).astype(w_dec_ref.dtype)
    y = (jnp.dot(w_dec_ref[...], fused,
                 preferred_element_type=jnp.float32) + b_dec_ref[...])
    # y: (C_out, N*HW), lanes ordered [b0 | b1 | ...]; store per batch so the
    # wrapper only needs a pure reshape back to NCHW.
    n, _, hw = o_ref.shape
    for b in range(n):
        o_ref[b] = y[:, b * hw:(b + 1) * hw]


def fused_cat_kernel(x_ref, w_enc_ref, b_enc_ref, w_dec_r_ref, w_dec_t_ref,
                     b_dec_ref, o_ref):
    """'cat' fusion as two accumulating matmuls (no concatenate copy)."""
    half = x_ref.shape[-1] // 2
    f = jnp.maximum(
        jnp.dot(w_enc_ref[...], x_ref[...],
                preferred_element_type=jnp.float32) + b_enc_ref[...],
        0.0).astype(w_dec_r_ref.dtype)
    # cat([f_r, f_t]) @ W_dec  ==  W_dec[:F].T @ f_r + W_dec[F:].T @ f_t
    y = (jnp.dot(w_dec_r_ref[...], f[:, :half],
                 preferred_element_type=jnp.float32)
         + jnp.dot(w_dec_t_ref[...], f[:, half:],
                   preferred_element_type=jnp.float32)
         + b_dec_ref[...])
    n, _, hw = o_ref.shape
    for b in range(n):
        o_ref[b] = y[:, b * hw:(b + 1) * hw]


# ----------------------- one-time parameter preparation ---------------------

def prepare_params(params, fusion_type, compute_dtype=jnp.float32):
    """Hoists weight transposes / splits / bias reshapes out of the call path."""
    f_enc = params["w_enc"].shape[1]
    prep = {
        "w_enc": jnp.asarray(params["w_enc"].T, compute_dtype),            # (F, C_in)
        "b_enc": jnp.asarray(params["b_enc"].reshape(-1, 1), jnp.float32),  # (F, 1)
        "b_dec": jnp.asarray(params["b_dec"].reshape(-1, 1), jnp.float32),  # (C_out, 1)
    }
    if fusion_type == "diff":
        prep["w_dec"] = jnp.asarray(params["w_dec_diff"].T, compute_dtype)  # (C_out, F)
    elif fusion_type == "cat":
        w_cat = params["w_dec_cat"]                                         # (2F, C_out)
        prep["w_dec_r"] = jnp.asarray(w_cat[:f_enc].T, compute_dtype)       # (C_out, F)
        prep["w_dec_t"] = jnp.asarray(w_cat[f_enc:].T, compute_dtype)       # (C_out, F)
    else:
        raise ValueError(f"unknown fusionType {fusion_type}")
    return prep


# ------------------------------- wrapper ------------------------------------

def lambda_shell_forward(ref_img, tgt_img, prep, fusion_type,
                         compute_dtype=jnp.float32):
    """Mirrors LambdaShell.forward: encode both, fuse, decode — one kernel."""
    n, c_in, h, w = ref_img.shape
    hw = h * w
    lanes = 2 * n * hw                       # ref|tgt and batch folded onto lanes

    # Fold [ref, tgt] x batch onto the lane axis: [C_in, 2*N*HW].  The ~8 KiB
    # transpose is one trivial XLA copy; the kernel then needs exactly one
    # encoder matmul and all intermediates are lane-dense (1024 lanes).
    x = jnp.stack([ref_img, tgt_img], axis=0)            # (2, N, C, H, W)
    x_slab = (x.transpose(2, 0, 1, 3, 4)                  # (C, 2, N, H, W)
               .reshape(c_in, lanes)
               .astype(compute_dtype))

    f_enc = prep["w_enc"].shape[0]
    if fusion_type == "diff":
        kernel = fused_diff_kernel
        weights = [prep["w_enc"], prep["b_enc"], prep["w_dec"], prep["b_dec"]]
        c_out = prep["w_dec"].shape[0]
        dec_matmuls = 1
    elif fusion_type == "cat":
        kernel = fused_cat_kernel
        weights = [prep["w_enc"], prep["b_enc"], prep["w_dec_r"],
                   prep["w_dec_t"], prep["b_dec"]]
        c_out = prep["w_dec_r"].shape[0]
        dec_matmuls = 2
    else:
        raise ValueError(f"unknown fusionType {fusion_type}")

    def resident_spec(shape):
        rank = len(shape)
        # Whole array is the block; constant index_map (single grid step).
        # TODO(synk): with real plugin weights + a multi-step grid, mark these
        # single-buffered (pipeline_mode=pl.Buffered(1)) and re-derive tiling
        # for v7x's 64 MiB VMEM.
        return pl.BlockSpec(shape, lambda i, _r=rank: (0,) * _r)

    flops = (2 * f_enc * c_in * lanes
             + 2 * dec_matmuls * c_out * f_enc * (n * hw))
    bytes_accessed = (
        x_slab.size * x_slab.dtype.itemsize
        + sum(wt.size * wt.dtype.itemsize for wt in weights)
        + n * c_out * hw * 4)

    out3 = pl.pallas_call(
        kernel,
        out_shape=jax.ShapeDtypeStruct((n, c_out, hw), jnp.float32),
        grid_spec=pltpu.PrefetchScalarGridSpec(
            num_scalar_prefetch=0,
            grid=(1,),                       # single step: launch-overhead bound
            in_specs=[resident_spec(x_slab.shape)]
                     + [resident_spec(wt.shape) for wt in weights],
            out_specs=resident_spec((n, c_out, hw)),
        ),
        compiler_params=pltpu.CompilerParams(
            dimension_semantics=("arbitrary",)),
        cost_estimate=pl.CostEstimate(
            flops=flops, transcendentals=0, bytes_accessed=bytes_accessed),
    )(x_slab, *weights)

    return out3.reshape(n, c_out, h, w)      # pure reshape, no transpose


# ------------------------------ pure-JAX ref ---------------------------------

def reference_forward(ref_img, tgt_img, params, fusion_type):
    n, c, h, w = ref_img.shape
    x_r = ref_img.reshape(n, c, h * w)
    x_t = tgt_img.reshape(n, c, h * w)
    w_e = params["w_enc"].T
    b_e = params["b_enc"].reshape(-1, 1)
    f_r = jnp.maximum(jnp.einsum("fc,ncm->nfm", w_e, x_r) + b_e, 0.0)
    f_t = jnp.maximum(jnp.einsum("fc,ncm->nfm", w_e, x_t) + b_e, 0.0)
    b_d = params["b_dec"].reshape(-1, 1)
    f = params["w_enc"].shape[1]
    if fusion_type == "diff":
        out = jnp.einsum("of,nfm->nom", params["w_dec_diff"].T, f_t - f_r) + b_d
    else:
        out = (jnp.einsum("of,nfm->nom", params["w_dec_cat"][:f].T, f_r)
               + jnp.einsum("of,nfm->nom", params["w_dec_cat"][f:].T, f_t)
               + b_d)
    return out.reshape(n, out.shape[1], h, w)


# ---------------------------------- main -------------------------------------

if __name__ == "__main__":
    # config analogue (encoder/decoder modules are synthetic 1x1-conv blocks)
    N, C_IN, H, W = 2, 4, 16, 16     # refImg / tgtImg: [2, 4, 16, 16] NCHW
    F_ENC = 32                       # encoder feature channels
    C_OUT = 4                        # decoder output channels

    key = jax.random.PRNGKey(0)
    k1, k2, k3, k4, k5, k6 = jax.random.split(key, 6)

    params = {
        "w_enc": jax.random.normal(k1, (C_IN, F_ENC), jnp.float32) * 0.1,
        "b_enc": jax.random.normal(k2, (1, F_ENC), jnp.float32) * 0.01,
        "w_dec_diff": jax.random.normal(k3, (F_ENC, C_OUT), jnp.float32) * 0.1,
        "w_dec_cat": jax.random.normal(k4, (2 * F_ENC, C_OUT), jnp.float32) * 0.1,
        "b_dec": jax.random.normal(k5, (1, C_OUT), jnp.float32) * 0.01,
    }

    ref_img = jax.random.normal(k6, (N, C_IN, H, W), jnp.float32)
    tgt_img = jax.random.normal(
        jax.random.fold_in(k6, 1), (N, C_IN, H, W), jnp.float32)

    ok = True
    for fusion_type in ("diff", "cat"):
        want = reference_forward(ref_img, tgt_img, params, fusion_type)
        # f32 path (v5e-friendly, tight tolerance) and bf16 MXU-operand path
        # (v6e/v7x fast path, looser tolerance).
        for compute_dtype, atol, rtol in ((jnp.float32, 1e-5, 1e-5),
                                          (jnp.bfloat16, 5e-2, 5e-2)):
            prep = prepare_params(params, fusion_type, compute_dtype)
            fwd = jax.jit(functools.partial(
                lambda_shell_forward,
                fusion_type=fusion_type,
                compute_dtype=compute_dtype))
            out = jax.block_until_ready(fwd(ref_img, tgt_img, prep))
            if out.shape != want.shape:
                ok = False
            elif not jnp.allclose(out, want, atol=atol, rtol=rtol):
                ok = False

    if ok:
        print("KERNEL_OK")
</pallas_src>

<mosaic_0001>
module attributes {stable_mosaic.version = 11 : i64} {
  func.func @fused_diff_kernel(%arg0: i32, %arg1: memref<4x1024xf32, #tpu.memory_space<vmem>>, %arg2: memref<32x4xf32, #tpu.memory_space<vmem>>, %arg3: memref<32x1xf32, #tpu.memory_space<vmem>>, %arg4: memref<4x32xf32, #tpu.memory_space<vmem>>, %arg5: memref<4x1xf32, #tpu.memory_space<vmem>>, %arg6: memref<2x4x256xf32, #tpu.memory_space<vmem>>) attributes {dimension_semantics = [#tpu.dimension_semantics<arbitrary>], iteration_bounds = array<i64: 1>, scalar_prefetch = 0 : i64, scratch_operands = 0 : i64, tpu.core_type = #tpu.core_type<tc>, window_params = [{pipeline_mode = #tpu.pipeline_mode<synchronous>, transform_indices = @transform_0, window_bounds = array<i64: 4, 1024>}, {pipeline_mode = #tpu.pipeline_mode<synchronous>, transform_indices = @transform_1, window_bounds = array<i64: 32, 4>}, {pipeline_mode = #tpu.pipeline_mode<synchronous>, transform_indices = @transform_2, window_bounds = array<i64: 32, 1>}, {pipeline_mode = #tpu.pipeline_mode<synchronous>, transform_indices = @transform_3, window_bounds = array<i64: 4, 32>}, {pipeline_mode = #tpu.pipeline_mode<synchronous>, transform_indices = @transform_4, window_bounds = array<i64: 4, 1>}, {pipeline_mode = #tpu.pipeline_mode<synchronous>, transform_indices = @transform_5, window_bounds = array<i64: 2, 4, 256>}]} {
    %c0 = arith.constant 0 : index
    %c0_0 = arith.constant 0 : index
    %0 = vector.load %arg2[%c0, %c0_0] : memref<32x4xf32, #tpu.memory_space<vmem>>, vector<32x4xf32>
    %c0_1 = arith.constant 0 : index
    %c0_2 = arith.constant 0 : index
    %1 = vector.load %arg1[%c0_1, %c0_2] : memref<4x1024xf32, #tpu.memory_space<vmem>>, vector<4x1024xf32>
    %cst = arith.constant dense<0.000000e+00> : vector<32x1024xf32>
    %2 = tpu.matmul %0, %1, %cst {dimension_numbers = #tpu.dot_dimension_numbers<[1], [0], [0], [1], [0, 0, 1, 1], [], []>} : vector<32x4xf32>, vector<4x1024xf32>, vector<32x1024xf32> -> vector<32x1024xf32>
    %c0_3 = arith.constant 0 : index
    %c0_4 = arith.constant 0 : index
    %3 = vector.load %arg3[%c0_3, %c0_4] : memref<32x1xf32, #tpu.memory_space<vmem>>, vector<32x1xf32>
    %4 = vector.broadcast %3 : vector<32x1xf32> to vector<32x1024xf32>
    %5 = arith.addf %2, %4 : vector<32x1024xf32>
    %cst_5 = arith.constant 0.000000e+00 : f32
    %6 = vector.broadcast %cst_5 : f32 to vector<32x1024xf32>
    %7 = arith.maximumf %5, %6 : vector<32x1024xf32>
    %8 = vector.extract_strided_slice %7 {offsets = [0, 512], sizes = [32, 512], strides = [1, 1]} : vector<32x1024xf32> to vector<32x512xf32>
    %9 = vector.extract_strided_slice %7 {offsets = [0, 0], sizes = [32, 512], strides = [1, 1]} : vector<32x1024xf32> to vector<32x512xf32>
    %10 = arith.subf %8, %9 : vector<32x512xf32>
    %c0_6 = arith.constant 0 : index
    %c0_7 = arith.constant 0 : index
    %11 = vector.load %arg4[%c0_6, %c0_7] : memref<4x32xf32, #tpu.memory_space<vmem>>, vector<4x32xf32>
    %cst_8 = arith.constant dense<0.000000e+00> : vector<4x512xf32>
    %12 = tpu.matmul %11, %10, %cst_8 {dimension_numbers = #tpu.dot_dimension_numbers<[1], [0], [0], [1], [0, 0, 1, 1], [], []>} : vector<4x32xf32>, vector<32x512xf32>, vector<4x512xf32> -> vector<4x512xf32>
    %c0_9 = arith.constant 0 : index
    %c0_10 = arith.constant 0 : index
    %13 = vector.load %arg5[%c0_9, %c0_10] : memref<4x1xf32, #tpu.memory_space<vmem>>, vector<4x1xf32>
    %14 = vector.broadcast %13 : vector<4x1xf32> to vector<4x512xf32>
    %15 = arith.addf %12, %14 : vector<4x512xf32>
    %16 = vector.extract_strided_slice %15 {offsets = [0, 0], sizes = [4, 256], strides = [1, 1]} : vector<4x512xf32> to vector<4x256xf32>
    %c0_11 = arith.constant 0 : index
    %c0_12 = arith.constant 0 : index
    %c0_13 = arith.constant 0 : index
    %17 = vector.load %arg6[%c0_11, %c0_12, %c0_13] : memref<2x4x256xf32, #tpu.memory_space<vmem>>, vector<1x4x256xf32>
    %18 = vector.shape_cast %17 : vector<1x4x256xf32> to vector<4x256xf32>
    %19 = vector.shape_cast %16 : vector<4x256xf32> to vector<1x4x256xf32>
    tpu.vector_store %arg6[%c0_11, %c0_12, %c0_13], %19 {strides = array<i32>} : memref<2x4x256xf32, #tpu.memory_space<vmem>>, vector<1x4x256xf32>,
    %20 = vector.extract_strided_slice %15 {offsets = [0, 256], sizes = [4, 256], strides = [1, 1]} : vector<4x512xf32> to vector<4x256xf32>
    %c1 = arith.constant 1 : index
    %c0_14 = arith.constant 0 : index
    %c0_15 = arith.constant 0 : index
    %21 = vector.load %arg6[%c1, %c0_14, %c0_15] : memref<2x4x256xf32, #tpu.memory_space<vmem>>, vector<1x4x256xf32>
    %22 = vector.shape_cast %21 : vector<1x4x256xf32> to vector<4x256xf32>
    %23 = vector.shape_cast %20 : vector<4x256xf32> to vector<1x4x256xf32>
    tpu.vector_store %arg6[%c1, %c0_14, %c0_15], %23 {strides = array<i32>} : memref<2x4x256xf32, #tpu.memory_space<vmem>>, vector<1x4x256xf32>,
    return
  }
  func.func @transform_0(%arg0: i32) -> (i32, i32) {
    %c0_i32 = arith.constant 0 : i32
    %c0_i32_0 = arith.constant 0 : i32
    %c0_i32_1 = arith.constant 0 : i32
    return %c0_i32, %c0_i32_0 : i32, i32
  }
  func.func @transform_1(%arg0: i32) -> (i32, i32) {
    %c0_i32 = arith.constant 0 : i32
    %c0_i32_0 = arith.constant 0 : i32
    %c0_i32_1 = arith.constant 0 : i32
    return %c0_i32, %c0_i32_0 : i32, i32
  }
  func.func @transform_2(%arg0: i32) -> (i32, i32) {
    %c0_i32 = arith.constant 0 : i32
    %c0_i32_0 = arith.constant 0 : i32
    %c0_i32_1 = arith.constant 0 : i32
    return %c0_i32, %c0_i32_0 : i32, i32
  }
  func.func @transform_3(%arg0: i32) -> (i32, i32) {
    %c0_i32 = arith.constant 0 : i32
    %c0_i32_0 = arith.constant 0 : i32
    %c0_i32_1 = arith.constant 0 : i32
    return %c0_i32, %c0_i32_0 : i32, i32
  }
  func.func @transform_4(%arg0: i32) -> (i32, i32) {
    %c0_i32 = arith.constant 0 : i32
    %c0_i32_0 = arith.constant 0 : i32
    %c0_i32_1 = arith.constant 0 : i32
    return %c0_i32, %c0_i32_0 : i32, i32
  }
  func.func @transform_5(%arg0: i32) -> (i32, i32, i32) {
    %c0_i32 = arith.constant 0 : i32
    %c0_i32_0 = arith.constant 0 : i32
    %c0_i32_1 = arith.constant 0 : i32
    %c0_i32_2 = arith.constant 0 : i32
    return %c0_i32, %c0_i32_0, %c0_i32_1 : i32, i32, i32
  }
}

</mosaic_0001>

<bundles_post_ra>
// kernel: lambda_shell_forward.1
= control target key start
LH: loop header
LB: loop body
LE: loop exit
PB: predicated region body
PF: predicated region fallthrough
CT: control target
= control target key end

     0   :  { %vm73_vm0 = vcmask 1043456   ;;  %v697_v2 = vmov 0.0   ;;  %v698_v6 = vmov 0   ;;  %vm60_vm1 = vcmask 31744   ;;  %s865_s0 = inlined_call_operand.vmem [shape: f32[4,1024], index: 0, kind: input, shape index: {}]   ;;  %s866_s1 = inlined_call_operand.vmem [shape: f32[32,4], index: 1, kind: input, shape index: {}]   ;;  %s867_s2 = inlined_call_operand.vmem [shape: f32[32,1], index: 2, kind: input, shape index: {}]   ;;  %s868_s4 = inlined_call_operand.vmem [shape: f32[4,1], index: 4, kind: input, shape index: {}]   ;;  %s869_s3 = inlined_call_operand.vmem [shape: f32[4,32], index: 3, kind: input, shape index: {}]   ;;  %s870_s5 = inlined_call_operand.vmem [shape: f32[2,4,256], index: 5, kind: output, shape index: {}]  }
   0x1   :  { %v24_v0 = vld [vmem:[%s865_s0] sm:$0xff]  ;;  %v25_v1 = vld [vmem:[%s865_s0 + $0x8] sm:$0xff]  ;;  %154 = vmatprep.mubr.f32.mxu0 %v697_v2  ;;  %243 = vmatprep.mubr.f32.mxu1 %v697_v2  ;;  %v26_v5 = vld [vmem:[%s865_s0 + $0x10] sm:$0xff]  ;;  %vm501_vm2 = vcmask 261120  }
   0x2   :  { %v56_v3 = vcombine.high %v24_v0, %v24_v0  ;;  %v57_v4 = vcombine.high %v25_v1, %v25_v1  ;;  %692 = vset.pattern.permute.xlu1 %v698_v6  ;;  %691 = vset.pattern.permute.xlu0 %v698_v6  ;;  %v20_v7 = vld [vmem:[%s866_s1] sm:$0xff]  ;;  %v27_v8 = vld [vmem:[%s865_s0 + $0x18] sm:$0xff]  ;;  %v58_v9 = vcombine.high %v26_v5, %v26_v5  ;;  %v21_v11 = vld [vmem:[%s866_s1 + $0x8] sm:$0xff] }
   0x3   :  { %v59_v10 = vcombine.high %v27_v8, %v27_v8  ;;  %v29_v12 = vld [vmem:[%s867_s2 + $0x8] sm:$0xff]  ;;  %v31_v13 = vld [vmem:[%s867_s2 + $0x18] sm:$0xff]  ;;  %v22_v14 = vld [vmem:[%s866_s1 + $0x10] sm:$0xff] }
   0x4   :  { %662 = vmatprep.subr.msk.mxu0 %vm73_vm0, %v56_v3  ;;  %668 = vmatprep.subr.msk.mxu1 %vm73_vm0, %v57_v4  ;;  %v28_v15 = vld [vmem:[%s867_s2] sm:$0xff]  ;;  %v30_v16 = vld [vmem:[%s867_s2 + $0x10] sm:$0xff]  ;;  %v23_v17 = vld [vmem:[%s866_s1 + $0x18] sm:$0xff] }
   0x5   :  { %663 = vmatpush1.msk.msra.mxu0 %vm73_vm0, %v24_v0  ;;  %669 = vmatpush1.msk.msra.mxu1 %vm73_vm0, %v25_v1  ;;  %v495_v18 = vld [vmem:[%s868_s4] sm:$0xf] }
   0x6   :  { %664 = vmatmul.mubr.msk.f32.vlgmr.msra.gmra.mxu0 %vm60_vm1, %v20_v7  ;;  %670 = vmatmul.mubr.msk.f32.vlgmr.msra.gmra.mxu1 %vm60_vm1, %v20_v7 }
   0x7   :  { %160 = vmatprep.mubr.f32.mxu0 %v697_v2  ;;  %249 = vmatprep.mubr.f32.mxu1 %v697_v2 }
   0x8   :  { %674 = vmatprep.subr.msk.mxu0 %vm73_vm0, %v58_v9  ;;  %680 = vmatprep.subr.msk.mxu1 %vm73_vm0, %v59_v10 }
   0x9   :  { %675 = vmatpush1.msk.msra.mxu0 %vm73_vm0, %v26_v5  ;;  %681 = vmatpush1.msk.msra.mxu1 %vm73_vm0, %v27_v8 }
   0xa   :  { %665 = vmatmul.mubr.msk.f32.gmra.mxu0 %vm60_vm1, %v21_v11  ;;  %671 = vmatmul.mubr.msk.f32.gmra.mxu1 %vm60_vm1, %v21_v11 }
   0xb   :  { %166 = vmatprep.mubr.f32.mxu0 %v697_v2  ;;  %255 = vmatprep.mubr.f32.mxu1 %v697_v2 }
   0xc   :  { %39 = vperm.xlu1 %692, %v29_v12   ;;  %49 = vperm.xlu0 %691, %v31_v13  }
   0xe   :  { %666 = vmatmul.mubr.msk.f32.gmra.mxu0 %vm60_vm1, %v22_v14  ;;  %672 = vmatmul.mubr.msk.f32.gmra.mxu1 %vm60_vm1, %v22_v14 }
   0xf   :  { %172 = vmatprep.mubr.f32.mxu0 %v697_v2  ;;  %261 = vmatprep.mubr.f32.mxu1 %v697_v2 }
  0x10   :  { %34 = vperm.xlu1 %692, %v28_v15   ;;  %44 = vperm.xlu0 %691, %v30_v16  }
  0x12   :  { %667 = vmatmul.mubr.msk.f32.gmra.mxu0 %vm60_vm1, %v23_v17  ;;  %673 = vmatmul.mubr.msk.f32.gmra.mxu1 %vm60_vm1, %v23_v17 }
  0x13   :  { %332 = vmatprep.mubr.f32.mxu0 %v697_v2  ;;  %421 = vmatprep.mubr.f32.mxu1 %v697_v2 }
  0x14   :  { %498 = vperm.xlu0 %691, %v495_v18  }
  0x16   :  { %676 = vmatmul.mubr.msk.f32.vlgmr.msra.gmra.mxu0 %vm60_vm1, %v20_v7  ;;  %682 = vmatmul.mubr.msk.f32.vlgmr.msra.gmra.mxu1 %vm60_vm1, %v20_v7 }
  0x17   :  { %338 = vmatprep.mubr.f32.mxu0 %v697_v2  ;;  %427 = vmatprep.mubr.f32.mxu1 %v697_v2 }
  0x1a   :  { %677 = vmatmul.mubr.msk.f32.gmra.mxu0 %vm60_vm1, %v21_v11  ;;  %683 = vmatmul.mubr.msk.f32.gmra.mxu1 %vm60_vm1, %v21_v11 }
  0x1b   :  { %344 = vmatprep.mubr.f32.mxu0 %v697_v2  ;;  %433 = vmatprep.mubr.f32.mxu1 %v697_v2 }
  0x1e   :  { %678 = vmatmul.mubr.msk.f32.gmra.mxu0 %vm60_vm1, %v22_v14  ;;  %684 = vmatmul.mubr.msk.f32.gmra.mxu1 %vm60_vm1, %v22_v14 }
  0x1f   :  { %350 = vmatprep.mubr.f32.mxu0 %v697_v2  ;;  %439 = vmatprep.mubr.f32.mxu1 %v697_v2 }
  0x22   :  { %679 = vmatmul.mubr.msk.f32.gmra.mxu0 %vm60_vm1, %v23_v17  ;;  %685 = vmatmul.mubr.msk.f32.gmra.mxu1 %vm60_vm1, %v23_v17 }
  0x23   :  { %569 = vmatprep.mubr.f32.mxu0 %v697_v2  ;;  %640 = vmatprep.mubr.f32.mxu1 %v697_v2 }
  0x87   :  { %v50_v33 = vpop.permute.xlu0 %49  ;;  %v40_v36 = vpop.permute.xlu1 %39 }
  0x8b   :  { %v45_v41 = vpop.permute.xlu0 %44  ;;  %v35_v44 = vpop.permute.xlu1 %34 }
  0xc6   :  { %v156_v19 = vpop.f32.mrf.mxu0  ;;  %v245_v20 = vpop.f32.mrf.mxu1 }
  0xc7   :  { %v830_v61 = vadd.f32 %v156_v19, %v35_v44  ;;  %v832_v62 = vadd.f32 %v245_v20, %v35_v44 }
  0xc8   :  { %v158_v21 = vpop.f32.mrf.mxu0  ;;  %v247_v22 = vpop.f32.mrf.mxu1 }
  0xc9   :  { %v834_v63 = vadd.f32 %v158_v21, %v35_v44  ;;  %v836_v0 = vadd.f32 %v247_v22, %v35_v44 }
  0xca   :  { %v162_v23 = vpop.f32.mrf.mxu0  ;;  %v251_v24 = vpop.f32.mrf.mxu1 }
  0xcb   :  { %v814_v45 = vadd.f32 %v162_v23, %v40_v36  ;;  %v816_v46 = vadd.f32 %v251_v24, %v40_v36 }
  0xcc   :  { %v164_v25 = vpop.f32.mrf.mxu0  ;;  %v253_v26 = vpop.f32.mrf.mxu1 }
  0xcd   :  { %v818_v47 = vadd.f32 %v164_v25, %v40_v36  ;;  %v820_v48 = vadd.f32 %v253_v26, %v40_v36  ;;  %v454_v1 = vmax.f32 %v814_v45, 0.0  ;;  %v456_v2 = vmax.f32 %v816_v46, 0.0 }
  0xce   :  { %v168_v27 = vpop.f32.mrf.mxu0  ;;  %v257_v28 = vpop.f32.mrf.mxu1 }
  0xcf   :  { %v822_v51 = vadd.f32 %v168_v27, %v45_v41  ;;  %v824_v52 = vadd.f32 %v257_v28, %v45_v41  ;;  %v455_v3 = vmax.f32 %v818_v47, 0.0  ;;  %v457_v4 = vmax.f32 %v820_v48, 0.0 }
  0xd0   :  { %v170_v29 = vpop.f32.mrf.mxu0  ;;  %v259_v30 = vpop.f32.mrf.mxu1 }
  0xd1   :  { %v826_v53 = vadd.f32 %v170_v29, %v45_v41  ;;  %v828_v54 = vadd.f32 %v259_v30, %v45_v41  ;;  %v462_v7 = vmax.f32 %v822_v51, 0.0  ;;  %v464_v8 = vmax.f32 %v824_v52, 0.0 }
  0xd2   :  { %v174_v31 = vpop.f32.mrf.mxu0  ;;  %v263_v32 = vpop.f32.mrf.mxu1 }
  0xd3   :  { %v175_v55 = vadd.f32 %v174_v31, %v50_v33  ;;  %v264_v56 = vadd.f32 %v263_v32, %v50_v33  ;;  %v463_v9 = vmax.f32 %v826_v53, 0.0  ;;  %v465_v10 = vmax.f32 %v828_v54, 0.0 }
  0xd4   :  { %v176_v34 = vpop.f32.mrf.mxu0  ;;  %v265_v35 = vpop.f32.mrf.mxu1 }
  0xd5   :  { %v177_v57 = vadd.f32 %v176_v34, %v50_v33  ;;  %v266_v58 = vadd.f32 %v265_v35, %v50_v33  ;;  %v470_v11 = vmax.f32 %v175_v55, 0.0  ;;  %v472_v12 = vmax.f32 %v264_v56, 0.0 }
  0xd6   :  { %v810_v37 = vpop.f32.mrf.mxu0  ;;  %v812_v38 = vpop.f32.mrf.mxu1 }
  0xd7   :  { %v471_v13 = vmax.f32 %v177_v57, 0.0  ;;  %v473_v14 = vmax.f32 %v266_v58, 0.0  ;;  %v335_v53 = vadd.f32 %v810_v37, %v35_v44 }
  0xd8   :  { %v336_v39 = vpop.f32.mrf.mxu0  ;;  %v425_v40 = vpop.f32.mrf.mxu1 }
  0xd9   :  { %v337_v21 = vadd.f32 %v336_v39, %v35_v44  ;;  %v426_v22 = vadd.f32 %v425_v40, %v35_v44  ;;  %v424_v39 = vadd.f32 %v812_v38, %v35_v44  ;;  %v447_v44 = vmax.f32 %v834_v63, 0.0 }
  0xda   :  { %v340_v42 = vpop.f32.mrf.mxu0  ;;  %v429_v43 = vpop.f32.mrf.mxu1 }
  0xdb   :  { %v341_v31 = vadd.f32 %v340_v42, %v40_v36  ;;  %v430_v32 = vadd.f32 %v429_v43, %v40_v36  ;;  %v451_v43 = vmax.f32 %v337_v21, 0.0  ;;  %v453_v57 = vmax.f32 %v426_v22, 0.0 }
  0xdc   :  { %v342_v49 = vpop.f32.mrf.mxu0  ;;  %v431_v50 = vpop.f32.mrf.mxu1  ;;  %v452_v37 = vmax.f32 %v424_v39, 0.0 }
  0xdd   :  { %v343_v27 = vadd.f32 %v342_v49, %v40_v36  ;;  %v432_v28 = vadd.f32 %v431_v50, %v40_v36  ;;  %v458_v56 = vmax.f32 %v341_v31, 0.0 }
  0xde   :  { %v346_v59 = vpop.f32.mrf.mxu0  ;;  %v435_v60 = vpop.f32.mrf.mxu1 }
  0xdf   :  { %v347_v23 = vadd.f32 %v346_v59, %v45_v41  ;;  %v436_v24 = vadd.f32 %v435_v60, %v45_v41  ;;  %v459_v54 = vmax.f32 %v343_v27, 0.0  ;;  %v461_v55 = vmax.f32 %v432_v28, 0.0 }
  0xe0   :  { %v348_v5 = vpop.f32.mrf.mxu0  ;;  %v437_v6 = vpop.f32.mrf.mxu1  ;;  %v450_v60 = vmax.f32 %v335_v53, 0.0 }
  0xe1   :  { %v349_v17 = vadd.f32 %v348_v5, %v45_v41  ;;  %v438_v18 = vadd.f32 %v437_v6, %v45_v41  ;;  %v466_v40 = vmax.f32 %v347_v23, 0.0  ;;  %v468_v41 = vmax.f32 %v436_v24, 0.0 }
  0xe2   :  { %v352_v15 = vpop.f32.mrf.mxu0  ;;  %v441_v16 = vpop.f32.mrf.mxu1  ;;  %v449_v6 = vmax.f32 %v836_v0, 0.0 }
  0xe3   :  { %v353_v19 = vadd.f32 %v352_v15, %v50_v33  ;;  %v442_v20 = vadd.f32 %v441_v16, %v50_v33  ;;  %v467_v47 = vmax.f32 %v349_v17, 0.0  ;;  %v469_v48 = vmax.f32 %v438_v18, 0.0 }
  0xe4   :  { %v354_v25 = vpop.f32.mrf.mxu0  ;;  %v443_v26 = vpop.f32.mrf.mxu1  ;;  %v486_v5 = vsub.f32 %v466_v40, %v462_v7  ;;  %v488_v38 = vsub.f32 %v468_v41, %v464_v8  ;;  %v479_v8 = vsub.f32 %v451_v43, %v447_v44  ;;  %v481_v63 = vsub.f32 %v453_v57, %v449_v6 }
  0xe5   :  { %v355_v29 = vadd.f32 %v354_v25, %v50_v33  ;;  %v444_v30 = vadd.f32 %v443_v26, %v50_v33  ;;  %v474_v34 = vmax.f32 %v353_v19, 0.0  ;;  %v476_v35 = vmax.f32 %v442_v20, 0.0 }
  0xe6   :  { %v460_v33 = vmax.f32 %v430_v32, 0.0  ;;  %v487_v58 = vsub.f32 %v467_v47, %v463_v9  ;;  %v489_v59 = vsub.f32 %v469_v48, %v465_v10  ;;  %v448_v9 = vmax.f32 %v832_v62, 0.0  ;;  %v499_v62 = vpop.permute.xlu0 %498 }
  0xe7   :  { %v475_v51 = vmax.f32 %v355_v29, 0.0  ;;  %v477_v52 = vmax.f32 %v444_v30, 0.0  ;;  %v490_v42 = vsub.f32 %v474_v34, %v470_v11  ;;  %v492_v36 = vsub.f32 %v476_v35, %v472_v12 }
  0xe8   :  { %v446_v11 = vmax.f32 %v830_v61, 0.0  ;;  %v482_v10 = vsub.f32 %v458_v56, %v454_v1  ;;  %v484_v7 = vsub.f32 %v460_v33, %v456_v2  ;;  %v494_v61 = vld [vmem:[%s869_s3] sm:$0xf] }
  0xe9   :  { %v491_v49 = vsub.f32 %v475_v51, %v471_v13  ;;  %v493_v50 = vsub.f32 %v477_v52, %v473_v14  ;;  %v483_v13 = vsub.f32 %v459_v54, %v455_v3  ;;  %v485_v14 = vsub.f32 %v461_v55, %v457_v4 }
  0xea   :  { %v478_v0 = vsub.f32 %v450_v60, %v446_v11  ;;  %v480_v3 = vsub.f32 %v452_v37, %v448_v9 }
  0xeb   :  { %529 = vmatprep.subr.mxu0 %v491_v49  ;;  %600 = vmatprep.subr.mxu1 %v493_v50 }
  0xec   :  { %530 = vmatpush1.msra.mxu0 %v490_v42  ;;  %601 = vmatpush1.msra.mxu1 %v492_v36 }
  0xed   :  { %531 = vmatprep.subr.mxu0 %v487_v58  ;;  %602 = vmatprep.subr.mxu1 %v489_v59 }
  0xee   :  { %532 = vmatpush1.msra.mxu0 %v486_v5  ;;  %603 = vmatpush1.msra.mxu1 %v488_v38 }
  0xef   :  { %533 = vmatprep.subr.mxu0 %v483_v13  ;;  %604 = vmatprep.subr.mxu1 %v485_v14 }
  0xf0   :  { %534 = vmatpush1.msra.mxu0 %v482_v10  ;;  %605 = vmatpush1.msra.mxu1 %v484_v7 }
  0xf1   :  { %535 = vmatprep.subr.mxu0 %v479_v8  ;;  %606 = vmatprep.subr.mxu1 %v481_v63 }
  0xf2   :  { %536 = vmatpush1.msra.mxu0 %v478_v0  ;;  %607 = vmatpush1.msra.mxu1 %v480_v3 }
  0xf3   :  { %686 = vmatmul.mubr.msk.f32.vlgmr.msra.gmra.mxu0 %vm501_vm2, %v494_v61  ;;  %687 = vmatmul.mubr.msk.f32.vlgmr.msra.gmra.mxu1 %vm501_vm2, %v494_v61 }
 0x1b3   :  { %v571_v45 = vpop.f32.mrf.mxu0  ;;  %v642_v46 = vpop.f32.mrf.mxu1 }
 0x1b4   :  { %v572_v4 = vadd.f32 %v571_v45, %v499_v62  ;;  %v643_v12 = vadd.f32 %v642_v46, %v499_v62 }
 0x1b5   :  { %v573_v1 = vpop.f32.mrf.mxu0  ;;  %v644_v2 = vpop.f32.mrf.mxu1 }
 0x1b6   :  { %v574_v15 = vadd.f32 %v573_v1, %v499_v62  ;;  %v645_v16 = vadd.f32 %v644_v2, %v499_v62 }
 0x1b8   :  { %v649_v17 = vcombine.low %v572_v4, %v574_v15  ;;  %v654_v18 = vcombine.low %v643_v12, %v645_v16 }
 0x1ba   :  { %651 = vst [vmem:[%s870_s5] sm:$0xff] %v649_v17  ;;  %688 = vst [vmem:[%s870_s5 + $0x8] sm:$0xff] %v654_v18 }

</bundles_post_ra>
